<compile_context>
chip_gen: v7x
topology: tpu7x:2x2x1
jax: 0.10.0
libtpu: 0.0.40
codegen_flags: <defaults>
</compile_context>

<pallas_src>
import functools
import math

import jax
import jax.numpy as jnp
from jax import lax
from jax.experimental import pallas as pl
from jax.experimental.pallas import tpu as pltpu


def attention_block_kernel(x_ref, mask_ref, gw_ref, gb_ref,
                           wq_ref, bq_ref, wk_ref, bk_ref, wv_ref, bv_ref,
                           wp_ref, bp_ref,
                           o_ref,
                           q_scr, k_scr, v_scr, a_scr,
                           *, num_heads, num_groups, eps, t_valid, t_q):
    x = x_ref[0]                          # [C, Tp] f32 (padded columns are zero)
    C, Tp = x.shape
    G = num_groups
    H = num_heads
    ch = C // H
    cpg = C // G
    n_q = Tp // t_q
    cd = q_scr.dtype                      # attention compute dtype (bf16 or f32)

    # ---- GroupNorm(G, C): two-stage reduction (lane reduce per channel, then
    # combine the tiny per-channel stats within each group).  Padded columns are
    # zero so the sums are unaffected; divide by the true element count.
    row_sum = jnp.sum(x, axis=1, keepdims=True)                       # [C, 1]
    row_sqs = jnp.sum(x * x, axis=1, keepdims=True)                   # [C, 1]
    g_sum = jnp.sum(row_sum.reshape(G, cpg), axis=1, keepdims=True)   # [G, 1]
    g_sqs = jnp.sum(row_sqs.reshape(G, cpg), axis=1, keepdims=True)   # [G, 1]
    n = jnp.float32(cpg * t_valid)
    mean = g_sum / n
    var = jnp.maximum(g_sqs / n - mean * mean, 0.0)
    inv = lax.rsqrt(var + jnp.float32(eps))                           # [G, 1]
    mean_c = jnp.broadcast_to(mean[:, None, :], (G, cpg, 1)).reshape(C, 1)
    inv_c = jnp.broadcast_to(inv[:, None, :], (G, cpg, 1)).reshape(C, 1)
    scale_c = inv_c * gw_ref[...]                                     # [C, 1]
    shift_c = gb_ref[...] - mean_c * scale_c                          # [C, 1]
    xn = (x * scale_c + shift_c).astype(jnp.bfloat16)                 # [C, Tp]

    # ---- qkv = Conv1d(C, 3C, 1) split into three [C, C] channel matmuls; each
    # output is bias-added and written straight to scratch (head-major rows; the
    # 1/sqrt(ch) attention scale is already folded into wq/bq wrapper-side).
    q_scr[...] = (jnp.dot(wq_ref[...], xn, preferred_element_type=jnp.float32)
                  + bq_ref[...]).astype(cd)
    k_scr[...] = (jnp.dot(wk_ref[...], xn, preferred_element_type=jnp.float32)
                  + bk_ref[...]).astype(cd)
    v_scr[...] = (jnp.dot(wv_ref[...], xn, preferred_element_type=jnp.float32)
                  + bv_ref[...]).astype(cd)

    has_pad = (t_valid != Tp)                      # static trace-time bool
    neg_bias = mask_ref[...] if has_pad else None  # [1, Tp] additive key mask
    ones_rows = jnp.ones((8, Tp), dtype=cd)        # softmax-denominator helper

    # ---- attention: one (head, query-block) tile per lax.fori_loop iteration so
    # only a single [t_q, Tp] logits/prob tile is live (VMEM-bounded; the next
    # tile's QK matmul can overlap this tile's softmax on VPU/EUP).
    def body(i, carry):
        if n_q == 1:
            h = i
            qoff = 0
        else:
            h = i // n_q
            qoff = pl.multiple_of((i % n_q) * t_q, t_q)
        hoff = pl.multiple_of(h * ch, ch)

        qh = q_scr[pl.ds(hoff, ch), pl.ds(qoff, t_q)]                 # [ch, t_q]
        kh = k_scr[pl.ds(hoff, ch), :]                                # [ch, Tp]
        vh = v_scr[pl.ds(hoff, ch), :]                                # [ch, Tp]

        # logits[t, s] = sum_c q[c, t] * k[c, s]; a tiny explicit transpose of q
        # keeps both big matmuls in MXU-native (plain / rhs-transposed) forms.
        logits = jnp.dot(jnp.transpose(qh), kh,
                         preferred_element_type=jnp.float32)          # [t_q, Tp]
        if has_pad:
            logits = logits + neg_bias                                # mask padded keys
        m = jnp.max(logits, axis=-1, keepdims=True)                   # [t_q, 1]
        p = jnp.exp(logits - m)                                       # [t_q, Tp] f32
        pc = p.astype(cd)

        # Deferred softmax normalization: un-normalized PV product, plus a ones-row
        # matmul for the per-query denominators (result is lane-oriented, so the
        # exact reciprocal broadcasts over the small [ch, t_q] tile for free).
        ah = lax.dot_general(vh, pc, (((1,), (1,)), ((), ())),
                             preferred_element_type=jnp.float32)      # [ch, t_q]
        denom = lax.dot_general(ones_rows, pc, (((1,), (1,)), ((), ())),
                                preferred_element_type=jnp.float32)[0:1]  # [1, t_q]
        a_blk = ah * pl.reciprocal(denom, approx=False)
        a_scr[pl.ds(hoff, ch), pl.ds(qoff, t_q)] = a_blk.astype(a_scr.dtype)
        return carry

    lax.fori_loop(0, H * n_q, body, 0)

    # ---- proj_out = Conv1d(C, C, 1), then residual (x kept in f32).
    h_out = jnp.dot(wp_ref[...], a_scr[...].astype(jnp.bfloat16),
                    preferred_element_type=jnp.float32) + bp_ref[...]  # [C, Tp]
    o_ref[0] = x_ref[0] + h_out


def _pick_query_block(tp):
    """Largest query tile <= 512 that divides the lane-padded sequence length."""
    for cand in (512, 384, 256, 128):
        if cand <= tp and tp % cand == 0:
            return cand
    return tp


def attention_block(x, params, *, num_heads, num_groups=32, eps=1e-5):
    B, C = x.shape[:2]
    spatial = x.shape[2:]
    T = math.prod(spatial)
    H = num_heads
    assert C % H == 0 and C % num_groups == 0
    ch = C // H

    Tp = max(128, ((T + 127) // 128) * 128)   # lane-pad sequence to multiple of 128
    Tq = _pick_query_block(Tp)                # query tile (key axis never tiled)

    # bf16 only pays off for the depth-starved attention dots when a head fills
    # full (16, 128) bf16 tiles; otherwise keep q/k/v (and p) in f32.
    cd = jnp.bfloat16 if (ch % 16 == 0 and ch >= 16) else jnp.float32

    x2 = x.reshape(B, C, T).astype(jnp.float32)
    if Tp != T:
        x2 = jnp.pad(x2, ((0, 0), (0, 0), (0, Tp - T)))

    # Additive key mask: 0 on valid keys, -1e30 on lane padding (single VPU add
    # in-kernel instead of iota + compare + select).
    key_idx = lax.broadcasted_iota(jnp.int32, (1, Tp), 1)
    mask_row = jnp.where(key_idx < T, 0.0, -1e30).astype(jnp.float32)

    gw = params["gn_w"].reshape(C, 1).astype(jnp.float32)
    gb = params["gn_b"].reshape(C, 1).astype(jnp.float32)

    # Split the qkv conv weights into head-major Q/K/V blocks (PyTorch layout is
    # per-head [q|k|v] interleaved) and fold the 1/sqrt(ch) attention scale into Q.
    attn_scale = 1.0 / math.sqrt(ch)
    w_qkv = params["w_qkv"].reshape(H, 3, ch, C)
    b_qkv = params["b_qkv"].reshape(H, 3, ch)
    wq = (w_qkv[:, 0].reshape(C, C) * attn_scale).astype(jnp.bfloat16)
    wk = w_qkv[:, 1].reshape(C, C).astype(jnp.bfloat16)
    wv = w_qkv[:, 2].reshape(C, C).astype(jnp.bfloat16)
    bq = (b_qkv[:, 0].reshape(C, 1) * attn_scale).astype(jnp.float32)
    bk = b_qkv[:, 1].reshape(C, 1).astype(jnp.float32)
    bv = b_qkv[:, 2].reshape(C, 1).astype(jnp.float32)
    wp = params["w_proj"].astype(jnp.bfloat16)
    bp = params["b_proj"].reshape(C, 1).astype(jnp.float32)

    kernel = functools.partial(attention_block_kernel,
                               num_heads=H, num_groups=num_groups,
                               eps=eps, t_valid=T, t_q=Tq)

    # Generation-aware VMEM budget: ~80% of physical capacity (~51 MiB on v7x,
    # ~102 MiB on v5e/v6e); fall back to the compiler default if unavailable.
    try:
        vmem_limit = int(pltpu.get_tpu_info().vmem_capacity_bytes * 0.8)
    except Exception:  # best-effort hardware query
        vmem_limit = None
    cp_kwargs = dict(dimension_semantics=("parallel",))
    if vmem_limit is not None:
        cp_kwargs["vmem_limit_bytes"] = vmem_limit

    def const_spec(shape):
        return pl.BlockSpec(shape, lambda b: (0, 0))

    # TODO(synk): the constant-index weight specs could be single-buffered
    # (pipeline_mode=pl.Buffered(1)) to claw back ~2 MiB at C=512; left at the
    # default here for portability across jax versions.
    # TODO(synk): if B == 1 on v7x (2 TensorCores), add a head- or query-block-
    # parallel grid axis so both cores are engaged.
    out = pl.pallas_call(
        kernel,
        out_shape=jax.ShapeDtypeStruct((B, C, Tp), jnp.float32),
        grid=(B,),
        in_specs=[
            pl.BlockSpec((1, C, Tp), lambda b: (b, 0, 0)),   # x
            const_spec((1, Tp)),                             # additive key mask
            const_spec((C, 1)),                              # GroupNorm weight
            const_spec((C, 1)),                              # GroupNorm bias
            const_spec((C, C)),                              # w_q (scaled)
            const_spec((C, 1)),                              # b_q (scaled)
            const_spec((C, C)),                              # w_k
            const_spec((C, 1)),                              # b_k
            const_spec((C, C)),                              # w_v
            const_spec((C, 1)),                              # b_v
            const_spec((C, C)),                              # w_proj
            const_spec((C, 1)),                              # b_proj
        ],
        out_specs=pl.BlockSpec((1, C, Tp), lambda b: (b, 0, 0)),
        scratch_shapes=[
            pltpu.VMEM((C, Tp), cd),   # q (head-major rows)
            pltpu.VMEM((C, Tp), cd),   # k
            pltpu.VMEM((C, Tp), cd),   # v
            pltpu.VMEM((C, Tp), cd),   # attention output
        ],
        input_output_aliases={0: 0},   # residual writes back into the x buffer
        compiler_params=pltpu.CompilerParams(**cp_kwargs),
    )(x2, mask_row, gw, gb, wq, bq, wk, bk, wv, bv, wp, bp)

    if Tp != T:
        out = out[:, :, :T]
    return out.reshape(x.shape)


def attention_block_reference(x, params, *, num_heads, num_groups=32, eps=1e-5):
    """Pure-JAX f32 mirror of PyTorch AttentionBlock._forward for validation."""
    B, C = x.shape[:2]
    T = math.prod(x.shape[2:])
    xr = x.reshape(B, C, T).astype(jnp.float32)
    xg = xr.reshape(B, num_groups, -1)
    mean = xg.mean(axis=-1, keepdims=True)
    var = ((xg - mean) ** 2).mean(axis=-1, keepdims=True)
    xn = ((xg - mean) / jnp.sqrt(var + eps)).reshape(B, C, T)
    xn = xn * params["gn_w"][None, :, None] + params["gn_b"][None, :, None]
    qkv = jnp.einsum("oc,bct->bot", params["w_qkv"], xn) + params["b_qkv"][None, :, None]
    H = num_heads
    ch = C // H
    qkv = qkv.reshape(B * H, 3 * ch, T)
    q, k, v = qkv[:, :ch], qkv[:, ch:2 * ch], qkv[:, 2 * ch:]
    scale = 1.0 / math.sqrt(math.sqrt(ch))
    w = jnp.einsum("bct,bcs->bts", q * scale, k * scale)
    w = jax.nn.softmax(w, axis=-1)
    a = jnp.einsum("bts,bcs->bct", w, v).reshape(B, C, T)
    h = jnp.einsum("oc,bct->bot", params["w_proj"], a) + params["b_proj"][None, :, None]
    return (xr + h).reshape(x.shape)


if __name__ == "__main__":
    B, C, Hs, Ws = 2, 32, 8, 8
    NUM_HEADS = 4
    NUM_GROUPS = 32   # normalization(channels) == GroupNorm32(32, channels)

    key = jax.random.PRNGKey(0)
    ks = jax.random.split(key, 7)
    params = {
        "gn_w": 1.0 + 0.1 * jax.random.normal(ks[0], (C,), jnp.float32),
        "gn_b": 0.1 * jax.random.normal(ks[1], (C,), jnp.float32),
        "w_qkv": jax.random.normal(ks[2], (3 * C, C), jnp.float32) / math.sqrt(C),
        "b_qkv": 0.01 * jax.random.normal(ks[3], (3 * C,), jnp.float32),
        # NOTE: the original module zero-initializes proj_out (zero_module); small
        # nonzero deterministic values are used so the attention path is exercised.
        "w_proj": 0.02 * jax.random.normal(ks[4], (C, C), jnp.float32),
        "b_proj": 0.01 * jax.random.normal(ks[5], (C,), jnp.float32),
    }
    x = jax.random.normal(ks[6], (B, C, Hs, Ws), jnp.float32)

    # TODO(synk): `checkpoint(...)` in forward() is a gradient-rematerialization
    # wrapper (training-only); forward semantics are identical, so it is a no-op here.
    out = attention_block(x, params, num_heads=NUM_HEADS, num_groups=NUM_GROUPS)
    out = jax.block_until_ready(out)

    ref = attention_block_reference(x, params, num_heads=NUM_HEADS, num_groups=NUM_GROUPS)
    assert out.shape == x.shape
    # bf16 conv-matmul inputs vs. the f32 reference -> loose tolerance.
    assert jnp.allclose(out, ref, atol=2e-2, rtol=2e-2), (
        f"max abs err {jnp.max(jnp.abs(out - ref))}")
    print("KERNEL_OK")
</pallas_src>

<mosaic_0001>
module attributes {stable_mosaic.version = 11 : i64} {
  func.func @attention_block_kernel(%arg0: i32, %arg1: memref<1x32x128xf32, #tpu.memory_space<vmem>>, %arg2: memref<1x128xf32, #tpu.memory_space<vmem>>, %arg3: memref<32x1xf32, #tpu.memory_space<vmem>>, %arg4: memref<32x1xf32, #tpu.memory_space<vmem>>, %arg5: memref<32x32xbf16, #tpu.memory_space<vmem>>, %arg6: memref<32x1xf32, #tpu.memory_space<vmem>>, %arg7: memref<32x32xbf16, #tpu.memory_space<vmem>>, %arg8: memref<32x1xf32, #tpu.memory_space<vmem>>, %arg9: memref<32x32xbf16, #tpu.memory_space<vmem>>, %arg10: memref<32x1xf32, #tpu.memory_space<vmem>>, %arg11: memref<32x32xbf16, #tpu.memory_space<vmem>>, %arg12: memref<32x1xf32, #tpu.memory_space<vmem>>, %arg13: memref<1x32x128xf32, #tpu.memory_space<vmem>>, %arg14: memref<32x128xf32, #tpu.memory_space<vmem>>, %arg15: memref<32x128xf32, #tpu.memory_space<vmem>>, %arg16: memref<32x128xf32, #tpu.memory_space<vmem>>, %arg17: memref<32x128xf32, #tpu.memory_space<vmem>>) attributes {dimension_semantics = [#tpu.dimension_semantics<parallel>], iteration_bounds = array<i64: 2>, scalar_prefetch = 0 : i64, scratch_operands = 4 : i64, tpu.core_type = #tpu.core_type<tc>, window_params = [{transform_indices = @transform_0, window_bounds = array<i64: 1, 32, 128>}, {pipeline_mode = #tpu.pipeline_mode<synchronous>, transform_indices = @transform_1, window_bounds = array<i64: 1, 128>}, {pipeline_mode = #tpu.pipeline_mode<synchronous>, transform_indices = @transform_2, window_bounds = array<i64: 32, 1>}, {pipeline_mode = #tpu.pipeline_mode<synchronous>, transform_indices = @transform_3, window_bounds = array<i64: 32, 1>}, {pipeline_mode = #tpu.pipeline_mode<synchronous>, transform_indices = @transform_4, window_bounds = array<i64: 32, 32>}, {pipeline_mode = #tpu.pipeline_mode<synchronous>, transform_indices = @transform_5, window_bounds = array<i64: 32, 1>}, {pipeline_mode = #tpu.pipeline_mode<synchronous>, transform_indices = @transform_6, window_bounds = array<i64: 32, 32>}, {pipeline_mode = #tpu.pipeline_mode<synchronous>, transform_indices = @transform_7, window_bounds = array<i64: 32, 1>}, {pipeline_mode = #tpu.pipeline_mode<synchronous>, transform_indices = @transform_8, window_bounds = array<i64: 32, 32>}, {pipeline_mode = #tpu.pipeline_mode<synchronous>, transform_indices = @transform_9, window_bounds = array<i64: 32, 1>}, {pipeline_mode = #tpu.pipeline_mode<synchronous>, transform_indices = @transform_10, window_bounds = array<i64: 32, 32>}, {pipeline_mode = #tpu.pipeline_mode<synchronous>, transform_indices = @transform_11, window_bounds = array<i64: 32, 1>}, {transform_indices = @transform_12, window_bounds = array<i64: 1, 32, 128>}]} {
    %c0 = arith.constant 0 : index
    %c0_0 = arith.constant 0 : index
    %c0_1 = arith.constant 0 : index
    %0 = vector.load %arg1[%c0, %c0_0, %c0_1] : memref<1x32x128xf32, #tpu.memory_space<vmem>>, vector<1x32x128xf32>
    %1 = vector.shape_cast %0 : vector<1x32x128xf32> to vector<32x128xf32>
    %cst = arith.constant dense<0.000000e+00> : vector<32xf32>
    %2 = vector.multi_reduction <add>, %1, %cst [1] : vector<32x128xf32> to vector<32xf32>
    %3 = vector.shape_cast %2 : vector<32xf32> to vector<32x1xf32>
    %4 = arith.mulf %1, %1 : vector<32x128xf32>
    %cst_2 = arith.constant dense<0.000000e+00> : vector<32xf32>
    %5 = vector.multi_reduction <add>, %4, %cst_2 [1] : vector<32x128xf32> to vector<32xf32>
    %6 = vector.shape_cast %5 : vector<32xf32> to vector<32x1xf32>
    %cst_3 = arith.constant dense<0.000000e+00> : vector<32xf32>
    %7 = vector.multi_reduction <add>, %3, %cst_3 [1] : vector<32x1xf32> to vector<32xf32>
    %8 = vector.shape_cast %7 : vector<32xf32> to vector<32x1xf32>
    %cst_4 = arith.constant dense<0.000000e+00> : vector<32xf32>
    %9 = vector.multi_reduction <add>, %6, %cst_4 [1] : vector<32x1xf32> to vector<32xf32>
    %10 = vector.shape_cast %9 : vector<32xf32> to vector<32x1xf32>
    %cst_5 = arith.constant 6.400000e+01 : f32
    %11 = vector.broadcast %cst_5 : f32 to vector<32x1xf32>
    %12 = arith.divf %8, %11 : vector<32x1xf32>
    %cst_6 = arith.constant 6.400000e+01 : f32
    %13 = vector.broadcast %cst_6 : f32 to vector<32x1xf32>
    %14 = arith.divf %10, %13 : vector<32x1xf32>
    %15 = arith.mulf %12, %12 : vector<32x1xf32>
    %16 = arith.subf %14, %15 : vector<32x1xf32>
    %cst_7 = arith.constant 0.000000e+00 : f32
    %17 = vector.broadcast %cst_7 : f32 to vector<32x1xf32>
    %18 = arith.maximumf %16, %17 : vector<32x1xf32>
    %cst_8 = arith.constant 9.99999974E-6 : f32
    %19 = vector.broadcast %cst_8 : f32 to vector<32x1xf32>
    %20 = arith.addf %18, %19 : vector<32x1xf32>
    %21 = math.rsqrt %20 : vector<32x1xf32>
    %22 = vector.shape_cast %12 : vector<32x1xf32> to vector<32x1x1xf32>
    %23 = vector.shape_cast %22 : vector<32x1x1xf32> to vector<32x1xf32>
    %24 = vector.shape_cast %21 : vector<32x1xf32> to vector<32x1x1xf32>
    %25 = vector.shape_cast %24 : vector<32x1x1xf32> to vector<32x1xf32>
    %c0_9 = arith.constant 0 : index
    %c0_10 = arith.constant 0 : index
    %26 = vector.load %arg3[%c0_9, %c0_10] : memref<32x1xf32, #tpu.memory_space<vmem>>, vector<32x1xf32>
    %27 = arith.mulf %25, %26 : vector<32x1xf32>
    %c0_11 = arith.constant 0 : index
    %c0_12 = arith.constant 0 : index
    %28 = vector.load %arg4[%c0_11, %c0_12] : memref<32x1xf32, #tpu.memory_space<vmem>>, vector<32x1xf32>
    %29 = arith.mulf %23, %27 : vector<32x1xf32>
    %30 = arith.subf %28, %29 : vector<32x1xf32>
    %31 = vector.broadcast %27 : vector<32x1xf32> to vector<32x128xf32>
    %32 = arith.mulf %1, %31 : vector<32x128xf32>
    %33 = vector.broadcast %30 : vector<32x1xf32> to vector<32x128xf32>
    %34 = arith.addf %32, %33 : vector<32x128xf32>
    %35 = arith.truncf %34 : vector<32x128xf32> to vector<32x128xbf16>
    %c0_13 = arith.constant 0 : index
    %c0_14 = arith.constant 0 : index
    %36 = vector.load %arg5[%c0_13, %c0_14] : memref<32x32xbf16, #tpu.memory_space<vmem>>, vector<32x32xbf16>
    %cst_15 = arith.constant dense<0.000000e+00> : vector<32x128xf32>
    %37 = tpu.matmul %36, %35, %cst_15 {dimension_numbers = #tpu.dot_dimension_numbers<[1], [0], [0], [1], [0, 0, 1, 1], [], []>} : vector<32x32xbf16>, vector<32x128xbf16>, vector<32x128xf32> -> vector<32x128xf32>
    %c0_16 = arith.constant 0 : index
    %c0_17 = arith.constant 0 : index
    %38 = vector.load %arg6[%c0_16, %c0_17] : memref<32x1xf32, #tpu.memory_space<vmem>>, vector<32x1xf32>
    %39 = vector.broadcast %38 : vector<32x1xf32> to vector<32x128xf32>
    %40 = arith.addf %37, %39 : vector<32x128xf32>
    %c0_18 = arith.constant 0 : index
    %c0_19 = arith.constant 0 : index
    %41 = vector.load %arg14[%c0_18, %c0_19] : memref<32x128xf32, #tpu.memory_space<vmem>>, vector<32x128xf32>
    tpu.vector_store %arg14[%c0_18, %c0_19], %40 {strides = array<i32>} : memref<32x128xf32, #tpu.memory_space<vmem>>, vector<32x128xf32>,
    %c0_20 = arith.constant 0 : index
    %c0_21 = arith.constant 0 : index
    %42 = vector.load %arg7[%c0_20, %c0_21] : memref<32x32xbf16, #tpu.memory_space<vmem>>, vector<32x32xbf16>
    %cst_22 = arith.constant dense<0.000000e+00> : vector<32x128xf32>
    %43 = tpu.matmul %42, %35, %cst_22 {dimension_numbers = #tpu.dot_dimension_numbers<[1], [0], [0], [1], [0, 0, 1, 1], [], []>} : vector<32x32xbf16>, vector<32x128xbf16>, vector<32x128xf32> -> vector<32x128xf32>
    %c0_23 = arith.constant 0 : index
    %c0_24 = arith.constant 0 : index
    %44 = vector.load %arg8[%c0_23, %c0_24] : memref<32x1xf32, #tpu.memory_space<vmem>>, vector<32x1xf32>
    %45 = vector.broadcast %44 : vector<32x1xf32> to vector<32x128xf32>
    %46 = arith.addf %43, %45 : vector<32x128xf32>
    %c0_25 = arith.constant 0 : index
    %c0_26 = arith.constant 0 : index
    %47 = vector.load %arg15[%c0_25, %c0_26] : memref<32x128xf32, #tpu.memory_space<vmem>>, vector<32x128xf32>
    tpu.vector_store %arg15[%c0_25, %c0_26], %46 {strides = array<i32>} : memref<32x128xf32, #tpu.memory_space<vmem>>, vector<32x128xf32>,
    %c0_27 = arith.constant 0 : index
    %c0_28 = arith.constant 0 : index
    %48 = vector.load %arg9[%c0_27, %c0_28] : memref<32x32xbf16, #tpu.memory_space<vmem>>, vector<32x32xbf16>
    %cst_29 = arith.constant dense<0.000000e+00> : vector<32x128xf32>
    %49 = tpu.matmul %48, %35, %cst_29 {dimension_numbers = #tpu.dot_dimension_numbers<[1], [0], [0], [1], [0, 0, 1, 1], [], []>} : vector<32x32xbf16>, vector<32x128xbf16>, vector<32x128xf32> -> vector<32x128xf32>
    %c0_30 = arith.constant 0 : index
    %c0_31 = arith.constant 0 : index
    %50 = vector.load %arg10[%c0_30, %c0_31] : memref<32x1xf32, #tpu.memory_space<vmem>>, vector<32x1xf32>
    %51 = vector.broadcast %50 : vector<32x1xf32> to vector<32x128xf32>
    %52 = arith.addf %49, %51 : vector<32x128xf32>
    %c0_32 = arith.constant 0 : index
    %c0_33 = arith.constant 0 : index
    %53 = vector.load %arg16[%c0_32, %c0_33] : memref<32x128xf32, #tpu.memory_space<vmem>>, vector<32x128xf32>
    tpu.vector_store %arg16[%c0_32, %c0_33], %52 {strides = array<i32>} : memref<32x128xf32, #tpu.memory_space<vmem>>, vector<32x128xf32>,
    %c0_34 = arith.constant 0 : index
    %c0_35 = arith.constant 0 : index
    %54 = vector.load %arg2[%c0_34, %c0_35] : memref<1x128xf32, #tpu.memory_space<vmem>>, vector<1x128xf32>
    %cst_36 = arith.constant 1.000000e+00 : f32
    %55 = vector.broadcast %cst_36 : f32 to vector<8x128xf32>
    %c0_i32 = arith.constant 0 : i32
    %c4_i32 = arith.constant 4 : i32
    %56 = arith.addi %c0_i32, %c4_i32 : i32
    %c1_i32 = arith.constant 1 : i32
    scf.for %arg18 = %c0_i32 to %56 step %c1_i32  : i32 {
      %c8_i32 = arith.constant 8 : i32
      %70 = arith.muli %arg18, %c8_i32 : i32
      %71 = tpu.assume_multiple %70, 8 : i32
      %72 = arith.index_cast %71 : i32 to index
      %c0_51 = arith.constant 0 : index
      %73 = vector.load %arg14[%72, %c0_51] : memref<32x128xf32, #tpu.memory_space<vmem>>, vector<8x128xf32>
      %74 = arith.index_cast %71 : i32 to index
      %c0_52 = arith.constant 0 : index
      %75 = vector.load %arg15[%74, %c0_52] : memref<32x128xf32, #tpu.memory_space<vmem>>, vector<8x128xf32>
      %76 = arith.index_cast %71 : i32 to index
      %c0_53 = arith.constant 0 : index
      %77 = vector.load %arg16[%76, %c0_53] : memref<32x128xf32, #tpu.memory_space<vmem>>, vector<8x128xf32>
      %78 = tpu.transpose %73, [1, 0] : vector<8x128xf32> -> vector<128x8xf32>
      %cst_54 = arith.constant dense<0.000000e+00> : vector<128x128xf32>
      %79 = tpu.matmul %78, %75, %cst_54 {dimension_numbers = #tpu.dot_dimension_numbers<[1], [0], [0], [1], [0, 0, 1, 1], [], []>} : vector<128x8xf32>, vector<8x128xf32>, vector<128x128xf32> -> vector<128x128xf32>
      %80 = vector.broadcast %54 : vector<1x128xf32> to vector<128x128xf32>
      %81 = arith.addf %79, %80 : vector<128x128xf32>
      %cst_55 = arith.constant dense<0xFF800000> : vector<128xf32>
      %82 = vector.multi_reduction <maximumf>, %81, %cst_55 [1] : vector<128x128xf32> to vector<128xf32>
      %83 = vector.shape_cast %82 : vector<128xf32> to vector<128x1xf32>
      %84 = vector.broadcast %83 : vector<128x1xf32> to vector<128x128xf32>
      %85 = arith.subf %81, %84 : vector<128x128xf32>
      %86 = math.exp %85 : vector<128x128xf32>
      %cst_56 = arith.constant dense<0.000000e+00> : vector<8x128xf32>
      %87 = tpu.matmul %77, %86, %cst_56 {dimension_numbers = #tpu.dot_dimension_numbers<[1], [1], [0], [0], [0, 0, 1, 0], [], []>} : vector<8x128xf32>, vector<128x128xf32>, vector<8x128xf32> -> vector<8x128xf32>
      %cst_57 = arith.constant dense<0.000000e+00> : vector<8x128xf32>
      %88 = tpu.matmul %55, %86, %cst_57 {dimension_numbers = #tpu.dot_dimension_numbers<[1], [1], [0], [0], [0, 0, 1, 0], [], []>} : vector<8x128xf32>, vector<128x128xf32>, vector<8x128xf32> -> vector<8x128xf32>
      %89 = vector.extract_strided_slice %88 {offsets = [0, 0], sizes = [1, 128], strides = [1, 1]} : vector<8x128xf32> to vector<1x128xf32>
      %90 = tpu.reciprocal %89 : vector<1x128xf32> -> vector<1x128xf32>
      %91 = vector.broadcast %90 : vector<1x128xf32> to vector<8x128xf32>
      %92 = arith.mulf %87, %91 : vector<8x128xf32>
      %93 = arith.index_cast %71 : i32 to index
      %c0_58 = arith.constant 0 : index
      %94 = vector.load %arg17[%93, %c0_58] : memref<32x128xf32, #tpu.memory_space<vmem>>, vector<8x128xf32>
      tpu.vector_store %arg17[%93, %c0_58], %92 {strides = array<i32>} : memref<32x128xf32, #tpu.memory_space<vmem>>, vector<8x128xf32>,
    }
    %c4_i32_37 = arith.constant 4 : i32
    %c0_38 = arith.constant 0 : index
    %c0_39 = arith.constant 0 : index
    %57 = vector.load %arg11[%c0_38, %c0_39] : memref<32x32xbf16, #tpu.memory_space<vmem>>, vector<32x32xbf16>
    %c0_40 = arith.constant 0 : index
    %c0_41 = arith.constant 0 : index
    %58 = vector.load %arg17[%c0_40, %c0_41] : memref<32x128xf32, #tpu.memory_space<vmem>>, vector<32x128xf32>
    %59 = arith.truncf %58 : vector<32x128xf32> to vector<32x128xbf16>
    %cst_42 = arith.constant dense<0.000000e+00> : vector<32x128xf32>
    %60 = tpu.matmul %57, %59, %cst_42 {dimension_numbers = #tpu.dot_dimension_numbers<[1], [0], [0], [1], [0, 0, 1, 1], [], []>} : vector<32x32xbf16>, vector<32x128xbf16>, vector<32x128xf32> -> vector<32x128xf32>
    %c0_43 = arith.constant 0 : index
    %c0_44 = arith.constant 0 : index
    %61 = vector.load %arg12[%c0_43, %c0_44] : memref<32x1xf32, #tpu.memory_space<vmem>>, vector<32x1xf32>
    %62 = vector.broadcast %61 : vector<32x1xf32> to vector<32x128xf32>
    %63 = arith.addf %60, %62 : vector<32x128xf32>
    %c0_45 = arith.constant 0 : index
    %c0_46 = arith.constant 0 : index
    %c0_47 = arith.constant 0 : index
    %64 = vector.load %arg1[%c0_45, %c0_46, %c0_47] : memref<1x32x128xf32, #tpu.memory_space<vmem>>, vector<1x32x128xf32>
    %65 = vector.shape_cast %64 : vector<1x32x128xf32> to vector<32x128xf32>
    %66 = arith.addf %65, %63 : vector<32x128xf32>
    %c0_48 = arith.constant 0 : index
    %c0_49 = arith.constant 0 : index
    %c0_50 = arith.constant 0 : index
    %67 = vector.load %arg13[%c0_48, %c0_49, %c0_50] : memref<1x32x128xf32, #tpu.memory_space<vmem>>, vector<1x32x128xf32>
    %68 = vector.shape_cast %67 : vector<1x32x128xf32> to vector<32x128xf32>
    %69 = vector.shape_cast %66 : vector<32x128xf32> to vector<1x32x128xf32>
    tpu.vector_store %arg13[%c0_48, %c0_49, %c0_50], %69 {strides = array<i32>} : memref<1x32x128xf32, #tpu.memory_space<vmem>>, vector<1x32x128xf32>,
    return
  }
  func.func @transform_0(%arg0: i32) -> (i32, i32, i32) {
    %c0_i32 = arith.constant 0 : i32
    %c0_i32_0 = arith.constant 0 : i32
    %c0_i32_1 = arith.constant 0 : i32
    return %arg0, %c0_i32, %c0_i32_0 : i32, i32, i32
  }
  func.func @transform_1(%arg0: i32) -> (i32, i32) {
    %c0_i32 = arith.constant 0 : i32
    %c0_i32_0 = arith.constant 0 : i32
    %c0_i32_1 = arith.constant 0 : i32
    return %c0_i32, %c0_i32_0 : i32, i32
  }
  func.func @transform_2(%arg0: i32) -> (i32, i32) {
    %c0_i32 = arith.constant 0 : i32
    %c0_i32_0 = arith.constant 0 : i32
    %c0_i32_1 = arith.constant 0 : i32
    return %c0_i32, %c0_i32_0 : i32, i32
  }
  func.func @transform_3(%arg0: i32) -> (i32, i32) {
    %c0_i32 = arith.constant 0 : i32
    %c0_i32_0 = arith.constant 0 : i32
    %c0_i32_1 = arith.constant 0 : i32
    return %c0_i32, %c0_i32_0 : i32, i32
  }
  func.func @transform_4(%arg0: i32) -> (i32, i32) {
    %c0_i32 = arith.constant 0 : i32
    %c0_i32_0 = arith.constant 0 : i32
    %c0_i32_1 = arith.constant 0 : i32
    return %c0_i32, %c0_i32_0 : i32, i32
  }
  func.func @transform_5(%arg0: i32) -> (i32, i32) {
    %c0_i32 = arith.constant 0 : i32
    %c0_i32_0 = arith.constant 0 : i32
    %c0_i32_1 = arith.constant 0 : i32
    return %c0_i32, %c0_i32_0 : i32, i32
  }
  func.func @transform_6(%arg0: i32) -> (i32, i32) {
    %c0_i32 = arith.constant 0 : i32
    %c0_i32_0 = arith.constant 0 : i32
    %c0_i32_1 = arith.constant 0 : i32
    return %c0_i32, %c0_i32_0 : i32, i32
  }
  func.func @transform_7(%arg0: i32) -> (i32, i32) {
    %c0_i32 = arith.constant 0 : i32
    %c0_i32_0 = arith.constant 0 : i32
    %c0_i32_1 = arith.constant 0 : i32
    return %c0_i32, %c0_i32_0 : i32, i32
  }
  func.func @transform_8(%arg0: i32) -> (i32, i32) {
    %c0_i32 = arith.constant 0 : i32
    %c0_i32_0 = arith.constant 0 : i32
    %c0_i32_1 = arith.constant 0 : i32
    return %c0_i32, %c0_i32_0 : i32, i32
  }
  func.func @transform_9(%arg0: i32) -> (i32, i32) {
    %c0_i32 = arith.constant 0 : i32
    %c0_i32_0 = arith.constant 0 : i32
    %c0_i32_1 = arith.constant 0 : i32
    return %c0_i32, %c0_i32_0 : i32, i32
  }
  func.func @transform_10(%arg0: i32) -> (i32, i32) {
    %c0_i32 = arith.constant 0 : i32
    %c0_i32_0 = arith.constant 0 : i32
    %c0_i32_1 = arith.constant 0 : i32
    return %c0_i32, %c0_i32_0 : i32, i32
  }
  func.func @transform_11(%arg0: i32) -> (i32, i32) {
    %c0_i32 = arith.constant 0 : i32
    %c0_i32_0 = arith.constant 0 : i32
    %c0_i32_1 = arith.constant 0 : i32
    return %c0_i32, %c0_i32_0 : i32, i32
  }
  func.func @transform_12(%arg0: i32) -> (i32, i32, i32) {
    %c0_i32 = arith.constant 0 : i32
    %c0_i32_0 = arith.constant 0 : i32
    %c0_i32_1 = arith.constant 0 : i32
    return %arg0, %c0_i32, %c0_i32_0 : i32, i32, i32
  }
}

</mosaic_0001>

<bundles_post_ra>
// kernel: tpu_custom_call.1
= control target key start
LH: loop header
LB: loop body
LE: loop exit
PB: predicated region body
PF: predicated region fallthrough
CT: control target
= control target key end

     0   :  { %17 = vsyncpa [#allocation7], 0  ;;  %s2569_s0 = inlined_call_operand.hbm [shape: f32[2,32,128], index: 0, kind: input, shape index: {}, may-alias: {0,12}]   ;;  %s2570_s1 = inlined_call_operand.vmem [shape: f32[1,128], index: 1, kind: input, shape index: {}]   ;;  %s2571_s2 = inlined_call_operand.vmem [shape: f32[32,1], index: 2, kind: input, shape index: {}]   ;;  %s2572_s3 = inlined_call_operand.vmem [shape: f32[32,1], index: 3, kind: input, shape index: {}]   ;;  %s2573_s4 = inlined_call_operand.vmem [shape: bf16[32,32], index: 4, kind: input, shape index: {}]   ;;  %s2574_s5 = inlined_call_operand.vmem [shape: f32[32,1], index: 5, kind: input, shape index: {}]   ;;  %s2575_s6 = inlined_call_operand.vmem [shape: bf16[32,32], index: 6, kind: input, shape index: {}]   ;;  %s2576_s7 = inlined_call_operand.vmem [shape: f32[32,1], index: 7, kind: input, shape index: {}]   ;;  %s2577_s8 = inlined_call_operand.vmem [shape: bf16[32,32], index: 8, kind: input, shape index: {}]   ;;  %s2578_s9 = inlined_call_operand.vmem [shape: f32[32,1], index: 9, kind: input, shape index: {}]   ;;  %s2579_s10 = inlined_call_operand.vmem [shape: bf16[32,32], index: 10, kind: input, shape index: {}]   ;;  %s2580_s11 = inlined_call_operand.vmem [shape: f32[32,1], index: 11, kind: input, shape index: {}]   ;;  %s2581_s12 = inlined_call_operand.hbm [shape: f32[2,32,128], index: 12, kind: output, shape index: {}, may-alias: {0,12}]  }
   0x1   :  { %19 = vsyncpa [#allocation7 + $0x1], 0 }
   0x2   :  { %20 = vsyncpa [#allocation8], 0 }
   0x3   :  { %22 = vsyncpa [#allocation8 + $0x1], 0  ;;  %s2133_s21 = smov 0   ;;  %s2135_s22 = smov 0  }
   0x4   :  { %s2137_s23 = smov 0   ;;  %s2139_s24 = smov 0  }
   0x5 LB: > { %2586 = sst [smem:[#allocation12_spill]] %s2047_s23  ;;  %s2154_s25 = sadd.s32 4294967295, %s2051_s24   ;;  %s2051_s24 = sphi %s2139_s24, %s2597_s24   ;;  %s2047_s23 = sphi %s2137_s23, %s2599_s23   ;;  %s2043_s22 = sphi %s2135_s22, %s2601_s22   ;;  %s2039_s21 = sphi %s2133_s21, %s2600_s21  }
   0x6   : > { %s1541_s26 = sadd.s32 4294967294, %s2051_s24   ;;  %s2158_s27 = sadd.s32 1, %s2051_s24  }
   0x7   : > { %2587 = sst [smem:[#allocation13_spill]] %s2158_s27  ;;  %s35_s28 = sadd.s32 1, %s2047_s23 }
   0x8   : > { %s32_s29 = ssub.s32 %s2051_s24, %s2158_s27  ;;  %p42_p0 = scmp.ne.s32.totalorder %s2047_s23, %s2043_s22 }
   0x9   : > { %p33_p1 = scmp.eq.s32.totalorder %s32_s29, 0  ;;  %p43_p2 = scmp.eq.s32.totalorder %s2051_s24, 0 }
   0xa   : > { %p48_p3 = scmp.ne.s32.totalorder %s2043_s22, %s2039_s21  ;;  %p49_p4 = scmp.eq.s32.totalorder %s2154_s25, 0 }
   0xb   : > { %s2170_s30 = scalar_select %p33_p1, %s2047_s23, %s35_s28  }
   0xc   : > { %p2172_p5 = por %p43_p2, %p42_p0  ;;  %p2176_p6 = por %p49_p4, %p48_p3 }
   0xd   : > { %2588 = sst [smem:[#allocation14_spill]] %s2170_s30  ;;  %p303_p7 = scmp.eq.s32.totalorder %s2154_s25, 1 }
   0xe   : > { %p309_p8 = scmp.eq.s32.totalorder %s1541_s26, 1  ;;  %p1846_p10 = scmp.lt.s32.totalorder %s2051_s24, 2 }
   0xf   : > { %p2183_p11 = por %p303_p7, %p42_p0  ;;  %s362_s17 = sand.u32 1, %s2047_s23  }
  0x10   : > { %p2187_p12 = por %p309_p8, %p48_p3  ;;  %s1589_s18 = sshll.u32 %s2051_s24, 9 }
  0x11   : > { %s2591_s15 = scalar_select %p2183_p11, 1, 0 }
  0x12   : > { %s2592_s16 = scalar_select %p2187_p12, 1, 0 }
  0x13   : > { %s1544_s19 = sshll.u32 %s362_s17, 5  ;;  %s2196_s29 = scalar_lea.hbm %s2569_s0, %s1589_s18 }
  0x14   : > { %s366_s26 = scalar_lea.vmem [#allocation6], %s1544_s19  ;;  %p2200_p13 = pnand %p1846_p10, %p2172_p5 }
  0x15   : > { %s373_s30 = sshll.u32 %s366_s26, 4  ;;  %s2206_s23 = scalar_lea.sflag [#allocation7], %s362_s17  ;;  %s2204_s30 = int_to_ptr.vmem [resolvable:$true] %s373_s30 }
  0x16   : > { %s1951_s20 = scalar_lea.hbm %s2196_s29, 512  ;;  %p1953_p1 = pneg %p2200_p13 }
  0x17   : > { %p1952_p0 = scmp.ne.s32.totalorder %s2196_s29, %s1951_s20  ;;  %s1956_s19 = scalar_lea.hbm %s2569_s0, 1024 }
  0x18   : > { %p1957_p4 = scmp.lt.u32.totalorder %s2196_s29, %s2569_s0  ;;  %p1958_p5 = scmp.lt.u32.totalorder %s1956_s19, %s1951_s20 }
  0x19   : > { %p1954_p2 = pnand %p1953_p1, %p1952_p0  ;;  %p1960_p8 = scmp.lt.u32.totalorder %s1951_s20, %s2196_s29 }
  0x1a   : > { %p1959_p7 = por %p1958_p5, %p1957_p4 }
  0x1b   : > { %p1955_p3 = pneg %p1954_p2 }
  0x1c   : > { %p1961_p10 = por %p1960_p8, %p1959_p7 }
  0x1e   : > { %p1962_p9 = pnand %p1961_p10, %p1955_p3 }
  0x20   : > { %1965 = shalt.err (!%p1962_p9)
}
  0x21   : > { %s1966_s17 = scalar_lea.vmem %s2204_s30, 512  ;;  %s2057_s18 = smov [#allocation6]  }
  0x22   : > { %p1967_p0 = scmp.ne.s32.totalorder %s2204_s30, %s1966_s17  ;;  %s1971_s13 = sshll.u32 %s2057_s18, 4  ;;  %s1972_s13 = int_to_ptr.vmem [resolvable:$false] %s1971_s13 }
  0x23   : > { %s1973_s28 = scalar_lea.vmem %s1972_s13, 1024  ;;  %p1974_p11 = scmp.lt.s32.totalorder %s2204_s30, %s1972_s13 }
  0x24   : > { %p1969_p2 = pnand %p1967_p0, %p1953_p1  ;;  %p1975_p4 = scmp.lt.s32.totalorder %s1973_s28, %s1966_s17 }
  0x26   : > { %p1970_p12 = pneg %p1969_p2  ;;  %p1976_p5 = por %p1975_p4, %p1974_p11 }
  0x28   : > { %p1977_p7 = pnand %p1976_p5, %p1970_p12 }
  0x2a   : > { %1980 = shalt.err (!%p1977_p7)
}
  0x2b   : > { %s2058_s20 = smov 128   ;;  %s2059_s19 = smov 8  }
  0x2c   : > { %1841 = dma.hbm_to_vmem [thread:$0]  (!%p2200_p13), %s2196_s29, 512, %s2204_s30, %s2206_s23, %s2058_s20, %s2058_s20, %s2059_s19  }
  0x2d   : > { %p1547_p9 = scmp.ge.s32.totalorder %s2051_s24, 1  ;;  %p381_p1 = scmp.lt.s32.totalorder %s2051_s24, 3 }
  0x2f   : > { %p382_p3 = pnand %p1547_p9, %p381_p1 }
  0x30   : > { %s2237_s26 = sand.u32 (!%p382_p3), 1, %s2043_s22  }
  0x31   : > { %385 = sbr.rel (%p382_p3) target bundleno = 1672 (0x688), region = 68  ;;  %s1548_s17 = sshll.u32 (!%p382_p3), %s2237_s26, 5 }
  0x32   : > { %s388_s18 = scalar_lea.sflag (!%p382_p3), [#allocation7], %s2237_s26  ;;  %s2243_s13 = scalar_lea.vmem (!%p382_p3), [#allocation6], %s1548_s17 }
  0x38   : > { %2030 = dma.done.wait (%p2176_p6), %s388_s18, 512  }
  0x39   : > { %2032 = vsyncadd (%p2176_p6), %s388_s18, 4294966784  ;;  %v2252_v0 = vld [vmem:[%s2570_s1] ss:$0 sm:$0xff]  ;;  %v2255_v1 = vld [vmem:[%s2243_s13 + $0x18] sm:$0xff]  ;;  %v2060_v9 = vmov 0   ;;  %vm602_vm0 = vcmask 261120  }
  0x3a   : > { %v2258_v2 = vld [vmem:[%s2243_s13] sm:$0xff]  ;;  %443 = vadd.xlane.f32.xlu1 %v2255_v1  ;;  %v2263_v3 = vld [vmem:[%s2243_s13 + $0x8] sm:$0xff]  ;;  %v2271_v6 = vld [vmem:[%s2243_s13 + $0x10] sm:$0xff]  ;;  %v448_v8 = vmul.f32 %v2255_v1, %v2255_v1  ;;  %1897 = vset.pattern.permute.xlu0 %v2060_v9  ;;  %s2375_s23 = scalar_lea.vmem [#allocation9], %s1548_s17  ;;  %s2377_s27 = smov 0  }
  0x3b   : > { %437 = vadd.xlane.f32.xlu0 %v2258_v2  ;;  %v445_v4 = vmul.f32 %v2258_v2, %v2258_v2  ;;  %v446_v5 = vmul.f32 %v2263_v3, %v2263_v3  ;;  %v447_v7 = vmul.f32 %v2271_v6, %v2271_v6  ;;  %1898 = vset.pattern.permute.xlu1 %v2060_v9  ;;  %v494_v42 = vld [vmem:[%s2571_s2] sm:$0xff]  ;;  %v495_v45 = vld [vmem:[%s2571_s2 + $0x8] sm:$0xff]  ;;  %v496_v49 = vld [vmem:[%s2571_s2 + $0x10] sm:$0xff] }
  0x3c   : > { %v569_v47 = vld [vmem:[%s2574_s5 + $0x8] sm:$0xff]  ;;  %v571_v51 = vld [vmem:[%s2574_s5 + $0x18] sm:$0xff]  ;;  %v502_v58 = vld [vmem:[%s2572_s3] sm:$0xff] }
  0x3d   : > { %v497_v54 = vld [vmem:[%s2571_s2 + $0x18] sm:$0xff]  ;;  %v667_v55 = vld [vmem:[%s2576_s7 + $0x8] sm:$0xff] }
  0x3e   : > { %449 = vadd.xlane.f32.xlu1 %v445_v4  ;;  %v669_v59 = vld [vmem:[%s2576_s7 + $0x18] sm:$0xff]  ;;  %v503_v62 = vld [vmem:[%s2572_s3 + $0x8] sm:$0xff] }
  0x3f   : > { %439 = vadd.xlane.f32.xlu0 %v2263_v3  ;;  %v764_v63 = vld [vmem:[%s2578_s9 + $0x8] sm:$0xff] }
  0x42   : > { %451 = vadd.xlane.f32.xlu1 %v446_v5 }
  0x43   : > { %441 = vadd.xlane.f32.xlu0 %v2271_v6 }
  0x46   : > { %455 = vadd.xlane.f32.xlu1 %v448_v8  ;;  %v766_v8 = vld [vmem:[%s2578_s9 + $0x18] sm:$0xff] }
  0x47   : > { %453 = vadd.xlane.f32.xlu0 %v447_v7  ;;  %v504_v7 = vld [vmem:[%s2572_s3 + $0x10] sm:$0xff] }
  0xc7   : > { %v444_v10 = vpop.xlane.xlu1 %443 }
  0xc8   : > { %v438_v11 = vpop.xlane.xlu0 %437  ;;  %v2280_v19 = vmul.f32 0.015625, %v444_v10 }
  0xc9   : > { %v466_v12 = vmul.f32 0.015625, %v438_v11 }
  0xca   : > { %v477_v28 = vmul.f32 %v2280_v19, %v2280_v19 }
  0xcb   : > { %v450_v14 = vpop.xlane.xlu1 %449  ;;  %v474_v15 = vmul.f32 %v466_v12, %v466_v12 }
  0xcc   : > { %v440_v13 = vpop.xlane.xlu0 %439  ;;  %v470_v17 = vmul.f32 0.015625, %v450_v14  ;;  %v568_v14 = vld [vmem:[%s2574_s5] sm:$0xff] }
  0xcd   : > { %v467_v16 = vmul.f32 0.015625, %v440_v13 }
  0xce   : > { %v478_v18 = vsub.f32 %v470_v17, %v474_v15  ;;  %v570_v15 = vld [vmem:[%s2574_s5 + $0x10] sm:$0xff]  ;;  %v1900_v17 = vld [vmem:[%s2575_s6] sm:$0xff]  }
  0xcf   : > { %v452_v21 = vpop.xlane.xlu1 %451  ;;  %v475_v22 = vmul.f32 %v467_v16, %v467_v16  ;;  %1670 = vmatprep.mubr.msk.bf16.mxu1 %vm602_vm0, %v1900_v17 }
  0xd0   : > { %v442_v20 = vpop.xlane.xlu0 %441  ;;  %v482_v23 = vmax.f32 %v478_v18, 0.0  ;;  %v471_v25 = vmul.f32 0.015625, %v452_v21  ;;  %v666_v18 = vld [vmem:[%s2576_s7] sm:$0xff]  ;;  %v765_v21 = vld [vmem:[%s2578_s9 + $0x10] sm:$0xff] }
  0xd1   : > { %v468_v24 = vmul.f32 0.015625, %v442_v20  ;;  %v763_v20 = vld [vmem:[%s2578_s9] sm:$0xff] }
  0xd2   : > { %v486_v26 = vadd.f32 1e-05, %v482_v23  ;;  %v479_v27 = vsub.f32 %v471_v25, %v475_v22 }
  0xd3   : > { %v476_v29 = vmul.f32 %v468_v24, %v468_v24  ;;  %v456_v31 = vpop.xlane.xlu1 %455 }
  0xd4   : > { %v454_v30 = vpop.xlane.xlu0 %453  ;;  %1905 = vrsqrt.f32 %v486_v26  ;;  %v483_v32 = vmax.f32 %v479_v27, 0.0  ;;  %v473_v34 = vmul.f32 0.015625, %v456_v31 }
  0xd5   : > { %v472_v33 = vmul.f32 0.015625, %v454_v30 }
  0xd6   : > { %v487_v35 = vadd.f32 1e-05, %v483_v32  ;;  %v481_v37 = vsub.f32 %v473_v34, %v477_v28 }
  0xd7   : > { %v480_v36 = vsub.f32 %v472_v33, %v476_v29 }
  0xd8   : > { %1907 = vrsqrt.f32 %v487_v35  ;;  %v485_v39 = vmax.f32 %v481_v37, 0.0 }
  0xd9   : > { %v484_v38 = vmax.f32 %v480_v36, 0.0 }
  0xda   : > { %v489_v41 = vadd.f32 1e-05, %v485_v39 }
  0xdb   : > { %v488_v40 = vadd.f32 1e-05, %v484_v38 }
  0xdd   : > { %1909 = vrsqrt.f32 %v488_v40 }
  0xde   : > { %v1906_v43 = vpop.eup %1905  ;;  %1911 = vrsqrt.f32 %v489_v41 }
  0xdf   : > { %v498_v44 = vmul.f32 %v1906_v43, %v494_v42 }
  0xe1   : > { %516 = vperm.xlu0 %1897, %v498_v44   ;;  %v506_v57 = vmul.f32 %v498_v44, %v466_v12  ;;  %v505_v12 = vld [vmem:[%s2572_s3 + $0x18] sm:$0xff] }
  0xe2   : > { %v1908_v46 = vpop.eup %1907 }
  0xe3   : > { %v499_v48 = vmul.f32 %v1908_v46, %v495_v45  ;;  %v510_v60 = vsub.f32 %v502_v58, %v506_v57 }
  0xe5   : > { %579 = vperm.xlu0 %1897, %v569_v47   ;;  %521 = vperm.xlu1 %1898, %v499_v48   ;;  %v507_v61 = vmul.f32 %v499_v48, %v467_v16  ;;  %v1899_v16 = vld [vmem:[%s2573_s4] sm:$0xff]  }
  0xe6   : > { %1662 = vmatprep.mubr.msk.bf16.mxu0 %vm602_vm0, %v1899_v16 }
  0xe7   : > { %v1910_v50 = vpop.eup %1909  ;;  %v511_v4 = vsub.f32 %v503_v62, %v507_v61 }
  0xe8   : > { %v500_v52 = vmul.f32 %v1910_v50, %v496_v49  ;;  %v1912_v53 = vpop.eup %1911 }
  0xe9   : > { %589 = vperm.xlu0 %1897, %v571_v51   ;;  %v501_v56 = vmul.f32 %v1912_v53, %v497_v54 }
  0xea   : > { %526 = vperm.xlu1 %1898, %v500_v52   ;;  %v508_v5 = vmul.f32 %v500_v52, %v468_v24 }
  0xeb   : > { %v509_v11 = vmul.f32 %v501_v56, %v2280_v19  ;;  %v668_v19 = vld [vmem:[%s2576_s7 + $0x10] sm:$0xff] }
  0xec   : > { %v512_v10 = vsub.f32 %v504_v7, %v508_v5 }
  0xed   : > { %677 = vperm.xlu0 %1897, %v667_v55   ;;  %v513_v13 = vsub.f32 %v505_v12, %v509_v11 }
  0xee   : > { %531 = vperm.xlu1 %1898, %v501_v56  }
  0xf1   : > { %687 = vperm.xlu0 %1897, %v669_v59  }
  0xf2   : > { %540 = vperm.xlu1 %1898, %v510_v60  }
  0xf5   : > { %774 = vperm.xlu0 %1897, %v764_v63  }
  0xf6   : > { %545 = vperm.xlu1 %1898, %v511_v4  }
  0xf9   : > { %784 = vperm.xlu0 %1897, %v766_v8  }
  0xfa   : > { %550 = vperm.xlu1 %1898, %v512_v10  }
  0xfe   : > { %555 = vperm.xlu1 %1898, %v513_v13  }
 0x102   : > { %574 = vperm.xlu1 %1898, %v568_v14  }
 0x106   : > { %584 = vperm.xlu1 %1898, %v570_v15  }
 0x10a   : > { %672 = vperm.xlu1 %1898, %v666_v18  }
 0x10e   : > { %682 = vperm.xlu1 %1898, %v668_v19  }
 0x112   : > { %769 = vperm.xlu1 %1898, %v763_v20  }
 0x116   : > { %779 = vperm.xlu1 %1898, %v765_v21  }
 0x160   : > { %v517_v25 = vpop.permute.xlu0 %516 }
 0x161   : > { %v534_v27 = vmul.f32 %v517_v25, %v2258_v2  ;;  %v1901_v2 = vld [vmem:[%s2573_s4 + $0x8] sm:$0xff]  }
 0x164   : > { %v522_v22 = vpop.permute.xlu1 %521  ;;  %v580_v41 = vpop.permute.xlu0 %579 }
 0x165   : > { %v535_v28 = vmul.f32 %v522_v22, %v2263_v3  ;;  %v1902_v3 = vld [vmem:[%s2575_s6 + $0x8] sm:$0xff]  }
 0x168   : > { %v590_v43 = vpop.permute.xlu0 %589 }
 0x169   : > { %v527_v23 = vpop.permute.xlu1 %526 }
 0x16a   : > { %v536_v34 = vmul.f32 %v527_v23, %v2271_v6  ;;  %v1904_v6 = vld [vmem:[%s2577_s8 + $0x8] sm:$0xff]  }
 0x16c   : > { %v678_v45 = vpop.permute.xlu0 %677 }
 0x16d   : > { %v532_v24 = vpop.permute.xlu1 %531 }
 0x16e   : > { %v537_v35 = vmul.f32 %v532_v24, %v2255_v1  ;;  %v1903_v1 = vld [vmem:[%s2577_s8] sm:$0xff]  }
 0x170   : > { %v688_v47 = vpop.permute.xlu0 %687 }
 0x171   : > { %v541_v26 = vpop.permute.xlu1 %540 }
 0x172   : > { %v558_v30 = vadd.f32 %v541_v26, %v534_v27 }
 0x174   : > { %v775_v63 = vpop.permute.xlu0 %774 }
 0x175   : > { %v546_v29 = vpop.permute.xlu1 %545 }
 0x176   : > { %v559_v31 = vadd.f32 %v546_v29, %v535_v28 }
 0x178   : > { %v562_v32 = vpack.c.bf16 %v559_v31, %v558_v30  ;;  %v785_v12 = vpop.permute.xlu0 %784 }
 0x179   : > { %v551_v33 = vpop.permute.xlu1 %550 }
 0x17a   : > { %1658 = vmatprep.subr.bf16.mxu0 %v562_v32  ;;  %1666 = vmatprep.subr.bf16.mxu1 %v562_v32  ;;  %v560_v37 = vadd.f32 %v551_v33, %v536_v34 }
 0x17b   : > { %1659 = vmatpush3.bf16.msra.mxu0 %v562_v32  ;;  %1667 = vmatpush3.bf16.msra.mxu1 %v562_v32 }
 0x17d   : > { %v556_v36 = vpop.permute.xlu1 %555 }
 0x17e   : > { %v561_v38 = vadd.f32 %v556_v36, %v537_v35 }
 0x180   : > { %v563_v39 = vpack.c.bf16 %v561_v38, %v560_v37 }
 0x181   : > { %v575_v40 = vpop.permute.xlu1 %574 }
 0x182   : > { %1660 = vmatprep.subr.bf16.mxu0 %v563_v39  ;;  %1668 = vmatprep.subr.bf16.mxu1 %v563_v39 }
 0x183   : > { %1661 = vmatpush3.bf16.msra.mxu0 %v563_v39  ;;  %1669 = vmatpush3.bf16.msra.mxu1 %v563_v39 }
 0x184   : > { %1674 = vmatprep.subr.bf16.mxu0 %v562_v32 }
 0x185   : > { %v585_v42 = vpop.permute.xlu1 %584 }
 0x186   : > { %1663 = vmatmul.mubr.msk.bf16.vlgmr.msra.gmra.mrb[0].mxu0 %vm602_vm0, %v1901_v2  ;;  %1671 = vmatmul.mubr.msk.bf16.vlgmr.msra.gmra.mrb[0].mxu1 %vm602_vm0, %v1902_v3 }
 0x187   : > { %1675 = vmatpush3.bf16.msra.mxu0 %v562_v32  ;;  %1678 = vmatprep.mubr.msk.bf16.mxu0 %vm602_vm0, %v1903_v1 }
 0x188   : > { %1676 = vmatprep.subr.bf16.mxu0 %v563_v39 }
 0x189   : > { %v673_v44 = vpop.permute.xlu1 %672 }
 0x18b   : > { %1677 = vmatpush3.bf16.msra.mxu0 %v563_v39 }
 0x18d   : > { %v683_v46 = vpop.permute.xlu1 %682 }
 0x18e   : > { %1679 = vmatmul.mubr.msk.bf16.vlgmr.msra.gmra.mrb[4].mxu0 %vm602_vm0, %v1904_v6 }
 0x191   : > { %v770_v48 = vpop.permute.xlu1 %769 }
 0x195   : > { %v780_v7 = vpop.permute.xlu1 %779 }
 0x259   : > { %v1664_v49 = vpop.f32.mrb[0].mxu0  ;;  %v1672_v50 = vpop.f32.mrb[0].mxu1 }
 0x25a   : > { %v652_v51 = vadd.f32 %v1664_v49, %v585_v42  ;;  %v749_v52 = vadd.f32 %v1672_v50, %v683_v46  ;;  %v643_v53 = vpop.f32.mrb[1].mxu0  ;;  %v740_v54 = vpop.f32.mrb[1].mxu1 }
 0x25b   : > { %v644_v55 = vadd.f32 %v643_v53, %v575_v40  ;;  %v741_v56 = vadd.f32 %v740_v54, %v673_v44  ;;  %v1665_v57 = vpop.f32.mrb[2].mxu0  ;;  %v1673_v58 = vpop.f32.mrb[2].mxu1 }
 0x25c   : > { %660 = vst [vmem:[#allocation2 + $0x10] sm:$0xff] %v652_v51  ;;  %757 = vst [vmem:[#allocation3 + $0x10] sm:$0xff] %v749_v52  ;;  %v655_v59 = vadd.f32 %v1665_v57, %v590_v43  ;;  %v752_v60 = vadd.f32 %v1673_v58, %v688_v47  ;;  %v646_v61 = vpop.f32.mrb[3].mxu0  ;;  %v743_v62 = vpop.f32.mrb[3].mxu1 }
 0x25d   : > { %658 = vst [vmem:[#allocation2] sm:$0xff] %v644_v55  ;;  %755 = vst [vmem:[#allocation3] sm:$0xff] %v741_v56  ;;  %v647_v4 = vadd.f32 %v646_v61, %v580_v41  ;;  %v744_v5 = vadd.f32 %v743_v62, %v678_v45 }
 0x25e   : > { %661 = vst [vmem:[#allocation2 + $0x18] sm:$0xff] %v655_v59  ;;  %758 = vst [vmem:[#allocation3 + $0x18] sm:$0xff] %v752_v60 }
 0x25f   : > { %659 = vst [vmem:[#allocation2 + $0x8] sm:$0xff] %v647_v4  ;;  %756 = vst [vmem:[#allocation3 + $0x8] sm:$0xff] %v744_v5 }
 0x261   : > { %v1680_v8 = vpop.f32.mrb[4].mxu0 }
 0x262   : > { %v846_v10 = vadd.f32 %v1680_v8, %v780_v7  ;;  %v837_v11 = vpop.f32.mrb[5].mxu0 }
 0x263   : > { %v838_v13 = vadd.f32 %v837_v11, %v770_v48  ;;  %v1681_v14 = vpop.f32.mrb[6].mxu0 }
 0x264   : > { %854 = vst [vmem:[#allocation4 + $0x10] sm:$0xff] %v846_v10  ;;  %v849_v15 = vadd.f32 %v1681_v14, %v785_v12  ;;  %v840_v16 = vpop.f32.mrb[7].mxu0 }
 0x265   : > { %852 = vst [vmem:[#allocation4] sm:$0xff] %v838_v13  ;;  %v841_v17 = vadd.f32 %v840_v16, %v775_v63 }
 0x266   : > { %855 = vst [vmem:[#allocation4 + $0x18] sm:$0xff] %v849_v15 }
 0x267   : > { %853 = vst [vmem:[#allocation4 + $0x8] sm:$0xff] %v841_v17 }
 0x268 LB: >> { %s2383_s30 = sshll.u32 %s2055_s27, 3  ;;  %vm908_vm1 = vcmask 64512   ;;  %v2061_v51 = vmov 0.0|0.0   ;;  %vm2062_vm2 = vmmov 0   ;;  %v2063_v5 = vmov 0.0   ;;  %s862_s27 = sadd.s32 1, %s2055_s27   ;;  %s2055_s27 = sphi %s2377_s27, %s862_s27  }
 0x269   : >> { %s864_s14 = scalar_lea.vmem [#allocation2], %s2383_s30  ;;  %s866_s29 = scalar_lea.vmem [#allocation3], %s2383_s30  ;;  %1786 = vmatprep.subr.bf16.mxu1 %v2061_v51  ;;  %1740 = vmatprep.mubr.msk.f32.mxu1 %vm2062_vm2, %v2063_v5 }
 0x26a   : >> { %v865_v18 = vld [vmem:[%s864_s14] sm:$0xff]  ;;  %s868_s17 = scalar_lea.vmem [#allocation4], %s2383_s30  ;;  %s1328_s28 = scalar_lea.vmem [#allocation5], %s2383_s30 }
 0x26b   : >> { %870 = vxpose.xlu0.b32.start.end [1/1] (short) %v865_v18, 128  ;;  %v867_v19 = vld [vmem:[%s866_s29] sm:$0xff]  ;;  %p859_p6 = scmp.ge.s32.totalorder %s862_s27, 4  }
 0x26c   : >> { %1682 = vmatprep.subr.mxu0 %v867_v19  ;;  %1948 = vset.pattern.permute.xlu1 (%p859_p6), %v2060_v9  ;;  %s1590_s30 = sshll.u32 (%p859_p6), %s2154_s25, 9  ;;  %s1455_s27 = sshll.u32 (%p859_p6), %s2375_s23, 4  ;;  %s2522_s27 = int_to_ptr.vmem [resolvable:$true] %s1455_s27 }
 0x26d   : >> { %1683 = vmatpush3.msra.mxu0 %v867_v19  ;;  %s1442_s25 = scalar_lea.sflag (%p859_p6), [#allocation8], %s2237_s26  ;;  %p2594_p12 = scmp.ne.s32.totalorder (%p859_p6), %s2591_s15, 0 }
 0x26e   : >> { %1810 = vmatprep.subr.bf16.mxu0 %v2061_v51 }
 0x294   : > { %1947 = vset.pattern.permute.xlu0 (%p859_p6), %v2060_v9  ;;  %v1343_v9 = vld [vmem:[%s2580_s11 + $0x18] sm:$0xff] (%p859_p6) }
 0x2eb   : >> { %v886_v20 = vpop.trf.xlu0 }
 0x2ec   : >> { %1684 = vmatprep.mubr.msk.f32.mxu0 %vm908_vm1, %v886_v20 }
 0x2ef   : >> { %v887_v21 = vpop.trf.xlu0 }
 0x2f0   : >> { %1685 = vmatmul.mubr.msk.f32.vlgmr.msra.gmra.mrb[0].mxu0 %vm908_vm1, %v887_v21 }
 0x2f3   : >> { %v888_v22 = vpop.trf.xlu0 }
 0x2f4   : >> { %1687 = vmatprep.mubr.msk.f32.mxu0 %vm908_vm1, %v888_v22 }
 0x2f7   : >> { %v889_v23 = vpop.trf.xlu0 }
 0x2f8   : >> { %1688 = vmatmul.mubr.msk.f32.gmra.mrb[2].mxu0 %vm908_vm1, %v889_v23 }
 0x2fb   : >> { %v890_v24 = vpop.trf.xlu0 }
 0x2fc   : >> { %1690 = vmatprep.mubr.msk.f32.mxu0 %vm908_vm1, %v890_v24 }
 0x2ff   : >> { %v891_v25 = vpop.trf.xlu0 }
 0x300   : >> { %1691 = vmatmul.mubr.msk.f32.gmra.mrb[4].mxu0 %vm908_vm1, %v891_v25 }
 0x303   : >> { %v892_v26 = vpop.trf.xlu0 }
 0x304   : >> { %1693 = vmatprep.mubr.msk.f32.mxu0 %vm908_vm1, %v892_v26 }
 0x307   : >> { %v893_v27 = vpop.trf.xlu0 }
 0x308   : >> { %1694 = vmatmul.mubr.msk.f32.gmra.mrb[6].mxu0 %vm908_vm1, %v893_v27 }
 0x30b   : >> { %v894_v28 = vpop.trf.xlu0 }
 0x30c   : >> { %1696 = vmatprep.mubr.msk.f32.mxu0 %vm908_vm1, %v894_v28 }
 0x30f   : >> { %v895_v29 = vpop.trf.xlu0 }
 0x310   : >> { %1697 = vmatmul.mubr.msk.f32.gmra.mrb[8].mxu0 %vm908_vm1, %v895_v29 }
 0x313   : >> { %v896_v30 = vpop.trf.xlu0 }
 0x314   : >> { %1699 = vmatprep.mubr.msk.f32.mxu0 %vm908_vm1, %v896_v30 }
 0x317   : >> { %v897_v31 = vpop.trf.xlu0 }
 0x318   : >> { %1700 = vmatmul.mubr.msk.f32.gmra.mrb[10].mxu0 %vm908_vm1, %v897_v31 }
 0x31b   : >> { %v898_v32 = vpop.trf.xlu0 }
 0x31c   : >> { %1702 = vmatprep.mubr.msk.f32.mxu0 %vm908_vm1, %v898_v32 }
 0x31f   : >> { %v899_v33 = vpop.trf.xlu0 }
 0x320   : >> { %1703 = vmatmul.mubr.msk.f32.gmra.mrb[12].mxu0 %vm908_vm1, %v899_v33 }
 0x323   : >> { %v900_v34 = vpop.trf.xlu0 }
 0x324   : >> { %1705 = vmatprep.mubr.msk.f32.mxu0 %vm908_vm1, %v900_v34 }
 0x327   : >> { %v901_v35 = vpop.trf.xlu0 }
 0x328   : >> { %1706 = vmatmul.mubr.msk.f32.gmra.mrb[14].mxu0 %vm908_vm1, %v901_v35 }
 0x329   : >> { %1775 = vmatprep.mubr.msk.f32.mxu0 %vm2062_vm2, %v2063_v5 }
 0x3c3   : >> { %v1686_v36 = vpop.f32.mrb[0].mxu0 }
 0x3c4   : >> { %v1029_v37 = vadd.f32 %v1686_v36, %v2252_v0  ;;  %v1023_v38 = vpop.f32.mrb[1].mxu0 }
 0x3c5   : >> { %v1024_v39 = vadd.f32 %v2252_v0, %v1023_v38 }
 0x3c6   : >> { %1104 = vmax.xlane.f32.xlu1 %v1029_v37 }
 0x3c7   : >> { %1102 = vmax.xlane.f32.xlu0 %v1024_v39 }
 0x3cb   : >> { %v1689_v2 = vpop.f32.mrb[2].mxu0 }
 0x3cc   : >> { %v1039_v3 = vadd.f32 %v1689_v2, %v2252_v0  ;;  %v1033_v1 = vpop.f32.mrb[3].mxu0 }
 0x3cd   : >> { %v1034_v6 = vadd.f32 %v2252_v0, %v1033_v1 }
 0x3ce   : >> { %1108 = vmax.xlane.f32.xlu1 %v1039_v3 }
 0x3d2   : >> { %1106 = vmax.xlane.f32.xlu1 %v1034_v6 }
 0x3d3   : >> { %v1692_v40 = vpop.f32.mrb[4].mxu0 }
 0x3d4   : >> { %v2408_v41 = vadd.f32 %v1692_v40, %v2252_v0  ;;  %v1043_v42 = vpop.f32.mrb[5].mxu0 }
 0x3d5   : >> { %v2412_v43 = vadd.f32 %v2252_v0, %v1043_v42 }
 0x3d6   : >> { %1112 = vmax.xlane.f32.xlu1 %v2408_v41 }
 0x3da   : >> { %1110 = vmax.xlane.f32.xlu1 %v2412_v43 }
 0x3db   : >> { %v1695_v44 = vpop.f32.mrb[6].mxu0 }
 0x3dc   : >> { %v2416_v45 = vadd.f32 %v1695_v44, %v2252_v0  ;;  %v1053_v46 = vpop.f32.mrb[7].mxu0 }
 0x3dd   : >> { %v2420_v47 = vadd.f32 %v2252_v0, %v1053_v46 }
 0x3de   : >> { %1116 = vmax.xlane.f32.xlu1 %v2416_v45 }
 0x3e2   : >> { %1114 = vmax.xlane.f32.xlu1 %v2420_v47 }
 0x3e3   : >> { %v1698_v48 = vpop.f32.mrb[8].mxu0 }
 0x3e4   : >> { %v2424_v49 = vadd.f32 %v1698_v48, %v2252_v0  ;;  %v1063_v50 = vpop.f32.mrb[9].mxu0 }
 0x3e5   : >> { %v2430_v52 = vadd.f32 %v2252_v0, %v1063_v50 }
 0x3e6   : >> { %1120 = vmax.xlane.f32.xlu1 %v2424_v49 }
 0x3ea   : >> { %1118 = vmax.xlane.f32.xlu1 %v2430_v52 }
 0x3eb   : >> { %v1701_v53 = vpop.f32.mrb[10].mxu0 }
 0x3ec   : >> { %v2434_v54 = vadd.f32 %v1701_v53, %v2252_v0  ;;  %v1073_v55 = vpop.f32.mrb[11].mxu0 }
 0x3ed   : >> { %v2438_v56 = vadd.f32 %v2252_v0, %v1073_v55 }
 0x3ee   : >> { %1124 = vmax.xlane.f32.xlu1 %v2434_v54 }
 0x3f2   : >> { %1122 = vmax.xlane.f32.xlu1 %v2438_v56 }
 0x3f3   : >> { %v1704_v57 = vpop.f32.mrb[12].mxu0 }
 0x3f4   : >> { %v2442_v58 = vadd.f32 %v1704_v57, %v2252_v0  ;;  %v1083_v59 = vpop.f32.mrb[13].mxu0 }
 0x3f5   : >> { %v2446_v60 = vadd.f32 %v2252_v0, %v1083_v59 }
 0x3f6   : >> { %1128 = vmax.xlane.f32.xlu1 %v2442_v58 }
 0x3fa   : >> { %1126 = vmax.xlane.f32.xlu1 %v2446_v60 }
 0x3fb   : >> { %v1707_v61 = vpop.f32.mrb[14].mxu0 }
 0x3fc   : >> { %v1093_v62 = vpop.f32.mrb[15].mxu0  ;;  %v2454_v4 = vadd.f32 %v1707_v61, %v2252_v0 }
 0x3fd   : >> { %v2450_v63 = vadd.f32 %v2252_v0, %v1093_v62  ;;  %v1340_v0 = vld [vmem:[%s2580_s11] sm:$0xff] (%p859_p6) }
 0x3fe   : > { %1346 = vperm.xlu0 (%p859_p6), %1947, %v1340_v0  }
 0x3ff   : >> { %1130 = vmax.xlane.f32.xlu1 %v2450_v63 }
 0x403   : >> { %1132 = vmax.xlane.f32.xlu1 %v2454_v4 }
 0x453   : >> { %v1105_v7 = vpop.xlane.xlu1 %1104 }
 0x454   : >> { %v1135_v8 = vsub.f32 %v1029_v37, %v1105_v7  ;;  %v1103_v10 = vpop.xlane.xlu0 %1102 }
 0x455   : >> { %v1134_v11 = vsub.f32 %v1024_v39, %v1103_v10 }
 0x456   : >> { %v1152_v12 = vmul.f32 1.442695, %v1135_v8 }
 0x457   : >> { %v1150_v13 = vmul.f32 1.442695, %v1134_v11 }
 0x458   : >> { %1913 = vpow2.f32 %v1152_v12 }
 0x459   : >> { %1915 = vpow2.f32 %v1150_v13 }
 0x45b   : >> { %v1109_v14 = vpop.xlane.xlu1 %1108 }
 0x45c   : >> { %v1137_v15 = vsub.f32 %v1039_v3, %v1109_v14 }
 0x45e   : >> { %v1156_v16 = vmul.f32 1.442695, %v1137_v15 }
 0x45f   : >> { %v1107_v17 = vpop.xlane.xlu1 %1106 }
 0x460   : >> { %v1136_v18 = vsub.f32 %v1034_v6, %v1107_v17  ;;  %1917 = vpow2.f32 %v1156_v16 }
 0x462   : >> { %v1914_v19 = vpop.eup %1913  ;;  %v1154_v20 = vmul.f32 1.442695, %v1136_v18 }
 0x463   : >> { %v1916_v21 = vpop.eup %1915  ;;  %v1113_v22 = vpop.xlane.xlu1 %1112 }
 0x464   : >> { %1919 = vpow2.f32 %v1154_v20  ;;  %v1139_v23 = vsub.f32 %v2408_v41, %v1113_v22  ;;  %v1787_v24 = vpack.c.bf16 %v1914_v19, %v1916_v21  ;;  %v869_v19 = vld [vmem:[%s868_s17] sm:$0xff]  ;;  %v2064_v20 = vmov 1.0   ;;  %s2520_s17 = scalar_lea.hbm (%p859_p6), %s2581_s12, %s1590_s30 }
 0x466   : >> { %1788 = vmatpush3.bf16.xpose.msra.mxu1 %v1787_v24  ;;  %1812 = vmatpush3.bf16.xpose.msra.mxu0 %v1787_v24  ;;  %v1160_v25 = vmul.f32 1.442695, %v1139_v23  ;;  %v1323_v23 = vlaneseq }
 0x467   : >> { %v1111_v26 = vpop.xlane.xlu1 %1110  ;;  %1789 = vmatprep.subr.bf16.mxu1 %v2061_v51  ;;  %1813 = vmatprep.subr.bf16.mxu0 %v2061_v51 }
 0x468   : >> { %v1138_v27 = vsub.f32 %v2412_v43, %v1111_v26  ;;  %1921 = vpow2.f32 %v1160_v25  ;;  %v1324_v26 = vshrl.u32 %v1323_v23, 7 }
 0x46a   : >> { %v1158_v28 = vmul.f32 1.442695, %v1138_v27  ;;  %v1918_v31 = vpop.eup %1917  ;;  %v1325_v27 = vsub.s32 0, %v1324_v26 }
 0x46b   : >> { %v1117_v29 = vpop.xlane.xlu1 %1116 }
 0x46c   : >> { %1923 = vpow2.f32 %v1158_v28  ;;  %v1141_v30 = vsub.f32 %v2416_v45, %v1117_v29 }
 0x46e   : >> { %v1920_v32 = vpop.eup %1919  ;;  %v1164_v33 = vmul.f32 1.442695, %v1141_v30 }
 0x46f   : >> { %v1115_v34 = vpop.xlane.xlu1 %1114  ;;  %v1790_v35 = vpack.c.bf16 %v1918_v31, %v1920_v32 }
 0x470   : >> { %v1140_v36 = vsub.f32 %v2420_v47, %v1115_v34  ;;  %1925 = vpow2.f32 %v1164_v33 }
 0x471   : >> { %1791 = vmatpush3.bf16.xpose.msra.mxu1 %v1790_v35  ;;  %1815 = vmatpush3.bf16.xpose.msra.mxu0 %v1790_v35 }
 0x472   : >> { %v1162_v37 = vmul.f32 1.442695, %v1140_v36  ;;  %1792 = vmatprep.subr.bf16.mxu1 %v2061_v51  ;;  %1816 = vmatprep.subr.bf16.mxu0 %v2061_v51  ;;  %v1922_v2 = vpop.eup %1921  ;;  %v1949_v36 = vld [vmem:[%s2579_s10] sm:$0xff] (%p859_p6)  }
 0x473   : >> { %v1121_v38 = vpop.xlane.xlu1 %1120 }
 0x474   : >> { %1927 = vpow2.f32 %v1162_v37  ;;  %v1143_v39 = vsub.f32 %v2424_v49, %v1121_v38  ;;  %v1342_v37 = vld [vmem:[%s2580_s11 + $0x10] sm:$0xff] (%p859_p6)  ;;  %v1950_v38 = vld [vmem:[%s2579_s10 + $0x8] sm:$0xff] (%p859_p6)  }
 0x475   : > { %1356 = vperm.xlu1 (%p859_p6), %1948, %v1342_v37  }
 0x476   : >> { %v1924_v3 = vpop.eup %1923  ;;  %v1168_v1 = vmul.f32 1.442695, %v1143_v39  ;;  %v1341_v39 = vld [vmem:[%s2580_s11 + $0x8] sm:$0xff] (%p859_p6) }
 0x477   : >> { %v1119_v6 = vpop.xlane.xlu1 %1118  ;;  %v1793_v40 = vpack.c.bf16 %v1922_v2, %v1924_v3  ;;  %1351 = vperm.xlu0 (%p859_p6), %1947, %v1341_v39  }
 0x478   : >> { %v1142_v41 = vsub.f32 %v2430_v52, %v1119_v6  ;;  %1929 = vpow2.f32 %v1168_v1  ;;  %v1431_v6 = vld [vmem:[%s2243_s13 + $0x10] sm:$0xff] (%p859_p6) }
 0x479   : >> { %1794 = vmatpush3.bf16.xpose.msra.mxu1 %v1793_v40  ;;  %1818 = vmatpush3.bf16.xpose.msra.mxu0 %v1793_v40 }
 0x47a   : >> { %v1166_v42 = vmul.f32 1.442695, %v1142_v41  ;;  %1795 = vmatprep.subr.bf16.mxu1 %v2061_v51  ;;  %1819 = vmatprep.subr.bf16.mxu0 %v2061_v51  ;;  %v1926_v45 = vpop.eup %1925 }
 0x47b   : >> { %v1125_v43 = vpop.xlane.xlu1 %1124  ;;  %1361 = vperm.xlu1 (%p859_p6), %1948, %v1343_v9  }
 0x47c   : >> { %1931 = vpow2.f32 %v1166_v42  ;;  %v1145_v44 = vsub.f32 %v2434_v54, %v1125_v43  ;;  %v1429_v42 = vld [vmem:[%s2243_s13] sm:$0xff] (%p859_p6) }
 0x47d   : > { %v1347_v3 = vpop.permute.xlu0 (%p859_p6), %1346 }
 0x47e   : >> { %v1928_v46 = vpop.eup %1927  ;;  %v1172_v47 = vmul.f32 1.442695, %v1145_v44 }
 0x47f   : >> { %v1123_v48 = vpop.xlane.xlu1 %1122  ;;  %v1796_v49 = vpack.c.bf16 %v1926_v45, %v1928_v46  ;;  %v1432_v46 = vld [vmem:[%s2243_s13 + $0x18] sm:$0xff] (%p859_p6) }
 0x480   : >> { %v1144_v50 = vsub.f32 %v2438_v56, %v1123_v48  ;;  %1933 = vpow2.f32 %v1172_v47 }
 0x481   : >> { %1797 = vmatpush3.bf16.xpose.msra.mxu1 %v1796_v49  ;;  %1821 = vmatpush3.bf16.xpose.msra.mxu0 %v1796_v49 }
 0x482   : >> { %v1170_v52 = vmul.f32 1.442695, %v1144_v50  ;;  %1798 = vmatprep.subr.bf16.mxu1 %v2061_v51  ;;  %1822 = vmatprep.subr.bf16.mxu0 %v2061_v51  ;;  %v1930_v54 = vpop.eup %1929 }
 0x483   : >> { %v1129_v53 = vpop.xlane.xlu1 %1128 }
 0x484   : >> { %1935 = vpow2.f32 %v1170_v52  ;;  %v1147_v55 = vsub.f32 %v2442_v58, %v1129_v53  ;;  %v1430_v52 = vld [vmem:[%s2243_s13 + $0x8] sm:$0xff] (%p859_p6)  ;;  %s1981_s13 = scalar_lea.vmem (%p859_p6), %s2522_s27, 512 }
 0x485   : > { %p1982_p11 = scmp.ne.s32.totalorder (%p859_p6), %s2522_s27, %s1981_s13 }
 0x486   : >> { %v1932_v57 = vpop.eup %1931  ;;  %v1176_v59 = vmul.f32 1.442695, %v1147_v55 }
 0x487   : >> { %v1127_v61 = vpop.xlane.xlu1 %1126  ;;  %v1799_v62 = vpack.c.bf16 %v1930_v54, %v1932_v57  ;;  %p1983_p13 = pnand (%p859_p6), %p1982_p11, %p2594_p12 }
 0x488   : >> { %v1146_v5 = vsub.f32 %v2446_v60, %v1127_v61  ;;  %1937 = vpow2.f32 %v1176_v59 }
 0x489   : >> { %1800 = vmatpush3.bf16.xpose.msra.mxu1 %v1799_v62  ;;  %1824 = vmatpush3.bf16.xpose.msra.mxu0 %v1799_v62  ;;  %p1984_p8 = pneg (%p859_p6), %p1983_p13 }
 0x48a   : >> { %v1174_v56 = vmul.f32 1.442695, %v1146_v5  ;;  %1801 = vmatprep.subr.bf16.mxu1 %v2061_v51  ;;  %1825 = vmatprep.subr.bf16.mxu0 %v2061_v51  ;;  %v1934_v8 = vpop.eup %1933 }
 0x48c   : >> { %1939 = vpow2.f32 %v1174_v56  ;;  %v1131_v7 = vpop.xlane.xlu1 %1130 }
 0x48d   : >> { %v1148_v58 = vsub.f32 %v2450_v63, %v1131_v7 }
 0x48e   : >> { %v1936_v10 = vpop.eup %1935 }
 0x48f   : >> { %v1802_v11 = vpack.c.bf16 %v1934_v8, %v1936_v10  ;;  %v1178_v12 = vmul.f32 1.442695, %v1148_v58 }
 0x490   : >> { %v1133_v13 = vpop.xlane.xlu1 %1132 }
 0x491   : >> { %v1149_v14 = vsub.f32 %v2454_v4, %v1133_v13  ;;  %1803 = vmatpush3.bf16.xpose.msra.mxu1 %v1802_v11  ;;  %1827 = vmatpush3.bf16.xpose.msra.mxu0 %v1802_v11  ;;  %1941 = vpow2.f32 %v1178_v12 }
 0x492   : >> { %1804 = vmatprep.subr.bf16.mxu1 %v2061_v51  ;;  %1828 = vmatprep.subr.bf16.mxu0 %v2061_v51  ;;  %v1938_v15 = vpop.eup %1937 }
 0x493   : >> { %v1180_v60 = vmul.f32 1.442695, %v1149_v14 }
 0x495   : >> { %1943 = vpow2.f32 %v1180_v60 }
 0x496   : >> { %v1940_v16 = vpop.eup %1939 }
 0x497   : >> { %v1805_v17 = vpack.c.bf16 %v1938_v15, %v1940_v16 }
 0x499   : >> { %1806 = vmatpush3.bf16.xpose.msra.mxu1 %v1805_v17  ;;  %1830 = vmatpush3.bf16.xpose.msra.mxu0 %v1805_v17 }
 0x49a   : >> { %1807 = vmatprep.subr.bf16.mxu1 %v2061_v51  ;;  %1831 = vmatprep.subr.bf16.mxu0 %v2061_v51 }
 0x49b   : >> { %v1942_v63 = vpop.eup %1941 }
 0x49f   : >> { %v1944_v4 = vpop.eup %1943 }
 0x4a0   : >> { %v1808_v18 = vpack.c.bf16 %v1944_v4, %v1942_v63 }
 0x4a2   : >> { %1809 = vmatpush3.bf16.xpose.msra.mxu1 %v1808_v18  ;;  %1833 = vmatpush3.bf16.xpose.msra.mxu0 %v1808_v18 }
 0x4a9   : >> { %1776 = vmatmul.mubr.f32.vlgmr.msra.gmra.mrb[16].mxu0 %v2064_v20  ;;  %1741 = vmatmul.mubr.f32.vlgmr.msra.gmra.mrb[0].mxu1 %v869_v19 }
 0x4aa   : > { %1782 = vmatprep.mubr.msk.bf16.mxu0 (%p859_p6), %vm602_vm0, %v1949_v36 }
 0x4f4   : > { %v1357_v2 = vpop.permute.xlu1 (%p859_p6), %1356 }
 0x4f6   : > { %v1352_v47 = vpop.permute.xlu0 (%p859_p6), %1351 }
 0x4fa   : > { %v1362_v43 = vpop.permute.xlu1 (%p859_p6), %1361 }
 0x57c   : >> { %v1318_v21 = vpop.f32.mrb[16].mxu0  ;;  %v1248_v22 = vpop.f32.mrb[0].mxu1 }
 0x57d   : >> { %1945 = vrcp.f32 %v1318_v21  ;;  %v1777_v24 = vpop.f32.mrb[17].mxu0  ;;  %v1742_v25 = vpop.f32.mrb[1].mxu1 }
 0x586   : > { %861 = sbr.rel (!%p859_p6) target bundleno = 616 (0x268), region = 124 }
 0x587   : >> { %v1946_v51 = vpop.eup %1945 }
 0x588   : >> { %v1326_v28 = vrot.slane %v1946_v51, %v1325_v27 }
 0x58a   : >> { %v1327_v29 = vmul.f32 %v1326_v28, %v1248_v22 }
 0x58c   : >> { %1329 = vst [vmem:[%s1328_s28] sm:$0xff] %v1327_v29  ;;  %s2065_s28 = smov (%p859_p6), [#allocation9]  }
 0x58d   : > { %s1985_s20 = sshll.u32 %s2065_s28, 4  ;;  %s1986_s20 = int_to_ptr.vmem [resolvable:$false] %s1985_s20 }
 0x58e   : > { %s1987_s19 = scalar_lea.vmem %s1986_s20, 1024  ;;  %p1988_p10 = scmp.lt.s32.totalorder %s2522_s27, %s1986_s20 }
 0x58f   : > { %p1989_p0 = scmp.lt.s32.totalorder %s1987_s19, %s1981_s13 }
 0x591   : > { %p1990_p2 = por %p1989_p0, %p1988_p10 }
 0x593   : > { %v1334_v30 = vld [vmem:[#allocation5] sm:$0xff]  ;;  %v1335_v31 = vld [vmem:[#allocation5 + $0x8] sm:$0xff]  ;;  %v1336_v32 = vld [vmem:[#allocation5 + $0x10] sm:$0xff]  ;;  %p1991_p4 = pnand %p1990_p2, %p1984_p8 }
 0x594   : > { %v1338_v33 = vpack.c.bf16 %v1335_v31, %v1334_v30  ;;  %v1337_v34 = vld [vmem:[#allocation5 + $0x18] sm:$0xff] }
 0x595   : > { %v1339_v35 = vpack.c.bf16 %v1337_v34, %v1336_v32 }
 0x596   : > { %1778 = vmatprep.subr.bf16.mxu0 %v1338_v33 }
 0x597   : > { %1779 = vmatpush3.bf16.msra.mxu0 %v1338_v33 }
 0x598   : > { %1780 = vmatprep.subr.bf16.mxu0 %v1339_v35 }
 0x59b   : > { %1781 = vmatpush3.bf16.msra.mxu0 %v1339_v35 }
 0x59e   : > { %1783 = vmatmul.mubr.msk.bf16.vlgmr.msra.gmra.mrb[0].mxu0 %vm602_vm0, %v1950_v38 }
 0x671   : > { %v1784_v1 = vpop.f32.mrb[0].mxu0 }
 0x672   : > { %v1423_v40 = vadd.f32 %v1784_v1, %v1357_v2  ;;  %v1414_v41 = vpop.f32.mrb[1].mxu0 }
 0x673   : > { %v1415_v44 = vadd.f32 %v1414_v41, %v1347_v3  ;;  %v1785_v45 = vpop.f32.mrb[2].mxu0 }
 0x674   : > { %v1435_v48 = vadd.f32 %v1431_v6, %v1423_v40  ;;  %v1426_v49 = vadd.f32 %v1785_v45, %v1362_v43  ;;  %v1417_v50 = vpop.f32.mrb[3].mxu0 }
 0x675   : > { %v1433_v53 = vadd.f32 %v1429_v42, %v1415_v44  ;;  %v1418_v55 = vadd.f32 %v1417_v50, %v1352_v47 }
 0x676   : > { %1439 = vst [vmem:[%s2375_s23 + $0x10] sm:$0xff] %v1435_v48  ;;  %v1436_v54 = vadd.f32 %v1432_v46, %v1426_v49 }
 0x677   : > { %1437 = vst [vmem:[%s2375_s23] sm:$0xff] %v1433_v53  ;;  %v1434_v57 = vadd.f32 %v1430_v52, %v1418_v55 }
 0x678   : > { %1440 = vst [vmem:[%s2375_s23 + $0x18] sm:$0xff] %v1436_v54 }
 0x679   : > { %1438 = vst [vmem:[%s2375_s23 + $0x8] sm:$0xff] %v1434_v57 }
 0x67a   : > { %1994 = shalt.err (!%p1991_p4)
}
 0x67b   : > { %s1995_s23 = scalar_lea.hbm %s2520_s17, 512  ;;  %s1999_s14 = scalar_lea.hbm %s2581_s12, 1024 }
 0x67c   : > { %p1996_p5 = scmp.ne.s32.totalorder %s2520_s17, %s1995_s23  ;;  %p2000_p1 = scmp.lt.u32.totalorder %s2520_s17, %s2581_s12 }
 0x67d   : > { %p2001_p3 = scmp.lt.u32.totalorder %s1999_s14, %s1995_s23  ;;  %p2003_p11 = scmp.lt.u32.totalorder %s1995_s23, %s2520_s17 }
 0x67e   : > { %p1997_p7 = pnand %p1996_p5, %p2594_p12 }
 0x67f   : > { %p2002_p6 = por %p2001_p3, %p2000_p1 }
 0x680   : > { %p1998_p9 = pneg %p1997_p7 }
 0x681   : > { %p2004_p13 = por %p2003_p11, %p2002_p6 }
 0x683   : > { %p2005_p8 = pnand %p2004_p13, %p1998_p9 }
 0x685   : > { %2008 = shalt.err (!%p2005_p8)
}
 0x686   : > { %s2066_s13 = smov 128   ;;  %s2067_s20 = smov 8  }
 0x687   : > { %1836 = dma.vmem_to_hbm [thread:$0]  (%p2594_p12), %s2522_s27, 512, %s2520_s17, %s1442_s25, %s2066_s13, %s2066_s13, %s2067_s20  }
 0x688 PF: > { %s1470_s19 = sand.u32 1, %s2039_s21   ;;  %p2595_p10 = scmp.ne.s32.totalorder %s2592_s16, 0 }
 0x689   : > { %p2596_p0 = scmp.ge.s32.totalorder %s2051_s24, 2  ;;  %s1471_s23 = scalar_lea.sflag [#allocation8], %s1470_s19 }
 0x68b   : > { %p1843_p2 = pnand %p2596_p0, %p2595_p10 }
 0x68d   : > { %2034 = dma.done.wait (!%p1843_p2), %s1471_s23, 512  }
 0x68e   : > { %2036 = vsyncadd (!%p1843_p2), %s1471_s23, 4294966784  ;;  %s2597_s24 = sld [smem:[#allocation13_spill]]  ;;  %s2598_s18 = sld [smem:[#allocation12_spill]] }
 0x68f   : > { %s2599_s23 = sld [smem:[#allocation14_spill]]  ;;  %s2600_s21 = smov %s2043_s22 }
 0x694   : > { %p25_p4 = scmp.ge.s32.totalorder %s2597_s24, 4   ;;  %s2601_s22 = smov %s2598_s18 }
 0x696   :  { %27 = sbr.rel (!%p25_p4) target bundleno = 5 (0x5), region = 135 }
 0x69d   :  { %1476 = vsyncpa [#allocation7], 1 }
 0x69e   :  { %1478 = vsyncpa [#allocation7 + $0x1], 1 }
 0x69f   :  { %1479 = vsyncpa [#allocation8], 1 }
 0x6a0   :  { %1481 = vsyncpa [#allocation8 + $0x1], 1 }

</bundles_post_ra>
